<compile_context>
chip_gen: v5e
topology: v5e:2x2
jax: 0.10.0
libtpu: 0.0.40
codegen_flags: <defaults>
</compile_context>

<pallas_src>
import jax
import jax.numpy as jnp
from jax import lax
from jax.experimental import pallas as pl
from jax.experimental.pallas import tpu as pltpu


def _round_up(x, m):
    return ((x + m - 1) // m) * m


def _vmem_limit_bytes(tile_bytes):
    """Scoped-VMEM limit: enough for our tiles (+headroom), capped per device."""
    try:
        cap = int(pltpu.get_tpu_info().vmem_capacity_bytes) // 2
    except Exception:
        cap = 32 * 1024 * 1024
    cap = max(cap, 16 * 1024 * 1024)
    want = int(1.5 * tile_bytes) + (2 << 20)
    return int(min(max(want, 16 * 1024 * 1024), cap))


def _choose_nf_tiling(nf, t_pad, w_itemsize, max_weight_block_bytes):
    """Pick (nf_pad, tk). Keep nf whole when the double-buffered weight block
    fits the budget (full-extent blocks are legal even when unaligned);
    otherwise pad nf to a 128 multiple and take the largest chunk that fits."""
    def w_block_bytes(tk):
        return 2 * tk * t_pad * w_itemsize      # double-buffered weight block

    if nf % 128 != 0 and w_block_bytes(nf) <= max_weight_block_bytes:
        return nf, nf
    nf_pad = _round_up(nf, 128)
    candidates = [nf_pad] + [c for c in (2048, 1024, 512, 256, 128) if c < nf_pad]
    for tk in candidates:
        if nf_pad % tk == 0 and w_block_bytes(tk) <= max_weight_block_bytes:
            return nf_pad, tk
    return nf_pad, 128                          # last resort; vmem limit is raised


def prepare_flatten_head_params(weight, bias, *, compute_dtype=jnp.bfloat16,
                                max_weight_block_bytes=12 * 1024 * 1024):
    """One-time parameter prep (do at parameter-load time, NOT per forward call).

    weight: [target_window, nf] (nn.Linear convention), bias: [target_window].
    """
    T, nf = weight.shape
    t_pad = _round_up(T, 8)
    w_itemsize = jnp.dtype(compute_dtype).itemsize
    nf_pad, tk = _choose_nf_tiling(nf, t_pad, w_itemsize, max_weight_block_bytes)

    w_p = jnp.asarray(weight).T.astype(compute_dtype)           # [nf, T]
    if (nf_pad, t_pad) != (nf, T):
        w_p = jnp.pad(w_p, ((0, nf_pad - nf), (0, t_pad - T)))
    b_p = jnp.asarray(bias).astype(jnp.float32)
    if t_pad != T:
        b_p = jnp.pad(b_p, (0, t_pad - T))
    b_p = b_p.reshape(1, t_pad)

    return {
        "weight": w_p,              # [nf_pad, T_pad], compute_dtype
        "bias": b_p,                # [1, T_pad], float32
        "nf": nf, "nf_pad": nf_pad, "tk": tk,
        "T": T, "T_pad": t_pad,
        "compute_dtype": jnp.dtype(compute_dtype),
    }


# ----------------------------------------------------------------------------
# Kernels
# ----------------------------------------------------------------------------
def _flatten_head_kernel_single(x_ref, w_ref, b_ref, o_ref):
    # Whole-nf path: one matmul per output row-block, bias fused, no scratch.
    o_ref[...] = (
        lax.dot_general(x_ref[...], w_ref[...],
                        dimension_numbers=(((1,), (0,)), ((), ())),
                        preferred_element_type=jnp.float32)
        + b_ref[...]
    ).astype(o_ref.dtype)


def _flatten_head_kernel_tiled(x_ref, w_ref, b_ref, o_ref, acc_ref):
    # Grid: (split, row-block, k). Reduction axis innermost; f32 VMEM accumulator
    # resident across k. Bias is folded into the k==0 init of split 0.
    s = pl.program_id(0)
    k = pl.program_id(2)

    @pl.when(k == 0)
    def _():
        acc_ref[...] = jnp.zeros_like(acc_ref)

    @pl.when(jnp.logical_and(k == 0, s == 0))
    def _():
        acc_ref[...] = jnp.broadcast_to(b_ref[...], acc_ref.shape)

    acc_ref[...] += lax.dot_general(x_ref[...], w_ref[...],
                                    dimension_numbers=(((1,), (0,)), ((), ())),
                                    preferred_element_type=jnp.float32)

    @pl.when(k == pl.num_programs(2) - 1)
    def _():
        o_ref[...] = acc_ref[...]


# ----------------------------------------------------------------------------
# Forward
# ----------------------------------------------------------------------------
def flatten_head_forward(x, params):
    """x: [B, n_vars, d_model, patch_num] -> [B, n_vars, target_window]."""
    B, n_vars, d_model, patch_num = x.shape
    nf = d_model * patch_num
    assert nf == params["nf"], "params were prepared for a different nf"

    T, t_pad = params["T"], params["T_pad"]
    nf_pad, tk = params["nf_pad"], params["tk"]
    w_p, b_p = params["weight"], params["bias"]
    cdtype = params["compute_dtype"]
    itemsize = cdtype.itemsize

    M = B * n_vars
    x2d = x.reshape(M, nf).astype(cdtype)       # Flatten(start_dim=-2) + compute cast

    m8 = _round_up(M, 8)
    if m8 <= 256:
        tm, m_pad = m8, m8
    else:
        tm, m_pad = 256, _round_up(M, 256)
    if (m_pad, nf_pad) != (M, nf):
        x2d = jnp.pad(x2d, ((0, m_pad - M), (0, nf_pad - nf)))

    grid_i = m_pad // tm
    grid_k = nf_pad // tk

    if grid_k == 1:
        # ---- whole-nf, scratch-free kernel ----------------------------------
        tile_bytes = (2 * (tm * nf_pad * itemsize + nf_pad * t_pad * itemsize
                           + t_pad * 4)
                      + 2 * tm * t_pad * 4)
        out2d = pl.pallas_call(
            _flatten_head_kernel_single,
            out_shape=jax.ShapeDtypeStruct((m_pad, t_pad), jnp.float32),
            grid_spec=pltpu.PrefetchScalarGridSpec(
                num_scalar_prefetch=0,
                grid=(grid_i,),
                in_specs=[
                    pl.BlockSpec((tm, nf_pad), lambda i: (i, 0)),      # x
                    pl.BlockSpec((nf_pad, t_pad), lambda i: (0, 0)),   # W (resident)
                    pl.BlockSpec((1, t_pad), lambda i: (0, 0)),        # bias
                ],
                out_specs=pl.BlockSpec((tm, t_pad), lambda i: (i, 0)),
            ),
            compiler_params=pltpu.CompilerParams(
                dimension_semantics=("parallel",),
                vmem_limit_bytes=_vmem_limit_bytes(tile_bytes),
            ),
            cost_estimate=pl.CostEstimate(
                flops=2 * m_pad * nf_pad * t_pad,
                transcendentals=0,
                bytes_accessed=(x2d.size * itemsize + w_p.size * itemsize
                                + b_p.size * 4 + m_pad * t_pad * 4),
            ),
        )(x2d, w_p, b_p)
    else:
        # ---- tiled reduction; 2-way split-K gives a parallel axis (v7x) -----
        n_splits = 2 if (grid_i == 1 and grid_k % 2 == 0) else 1
        gk = grid_k // n_splits

        tile_bytes = (2 * (tm * tk * itemsize + tk * t_pad * itemsize
                           + t_pad * 4 + tm * t_pad * 4)
                      + tm * t_pad * 4)
        parts = pl.pallas_call(
            _flatten_head_kernel_tiled,
            out_shape=jax.ShapeDtypeStruct((n_splits * m_pad, t_pad), jnp.float32),
            grid_spec=pltpu.PrefetchScalarGridSpec(
                num_scalar_prefetch=0,
                grid=(n_splits, grid_i, gk),
                in_specs=[
                    pl.BlockSpec((tm, tk),
                                 lambda s, i, k, gk=gk: (i, s * gk + k)),   # x
                    pl.BlockSpec((tk, t_pad),
                                 lambda s, i, k, gk=gk: (s * gk + k, 0)),   # W
                    pl.BlockSpec((1, t_pad), lambda s, i, k: (0, 0)),       # bias
                ],
                out_specs=pl.BlockSpec(
                    (tm, t_pad), lambda s, i, k, gi=grid_i: (s * gi + i, 0)),
                scratch_shapes=[pltpu.VMEM((tm, t_pad), jnp.float32)],
            ),
            compiler_params=pltpu.CompilerParams(
                dimension_semantics=("parallel", "parallel", "arbitrary"),
                vmem_limit_bytes=_vmem_limit_bytes(tile_bytes),
            ),
            cost_estimate=pl.CostEstimate(
                flops=2 * m_pad * nf_pad * t_pad,
                transcendentals=0,
                bytes_accessed=(x2d.size * itemsize + grid_i * w_p.size * itemsize
                                + b_p.size * 4 + n_splits * m_pad * t_pad * 4),
            ),
        )(x2d, w_p, b_p)
        out2d = parts if n_splits == 1 else parts[:m_pad] + parts[m_pad:]

    out2d = out2d[:M, :T].astype(x.dtype)
    return out2d.reshape(B, n_vars, T)


if __name__ == "__main__":
    # Small shapes consistent with the module:
    #   B=2, n_vars=4, d_model=16, patch_num=2 -> nf=32, target_window=8
    B, n_vars, d_model, patch_num = 2, 4, 16, 2
    nf = d_model * patch_num
    target_window = 8

    keys = jax.random.split(jax.random.PRNGKey(0), 6)
    x = jax.random.normal(keys[0], (B, n_vars, d_model, patch_num), dtype=jnp.float32)
    weight = jax.random.normal(keys[1], (target_window, nf), dtype=jnp.float32) * 0.05
    bias = jax.random.normal(keys[2], (target_window,), dtype=jnp.float32) * 0.05

    ref = jnp.einsum("bvn,tn->bvt", x.reshape(B, n_vars, nf), weight,
                     precision=lax.Precision.HIGHEST) + bias

    # 1) f32 compute path (tight semantics check; whole-nf scratch-free kernel).
    p_f32 = prepare_flatten_head_params(weight, bias, compute_dtype=jnp.float32)
    out_f32 = jax.block_until_ready(flatten_head_forward(x, p_f32))
    assert out_f32.shape == (B, n_vars, target_window)
    assert jnp.allclose(out_f32, ref, atol=3e-3, rtol=3e-3)

    # 2) Recommended bf16-weight path (default).
    p_bf16 = prepare_flatten_head_params(weight, bias)
    out_bf16 = jax.block_until_ready(flatten_head_forward(x, p_bf16))
    assert out_bf16.shape == (B, n_vars, target_window)
    assert jnp.allclose(out_bf16.astype(jnp.float32), ref, atol=3e-2, rtol=3e-2)

    # 3) Tiled accumulator + split-K path (forced via a tiny weight-block budget).
    d_model2, patch2, T2 = 64, 8, 96
    nf2 = d_model2 * patch2
    x2 = jax.random.normal(keys[3], (B, n_vars, d_model2, patch2), dtype=jnp.float32)
    w2 = jax.random.normal(keys[4], (T2, nf2), dtype=jnp.float32) * 0.02
    b2 = jax.random.normal(keys[5], (T2,), dtype=jnp.float32) * 0.02
    p2 = prepare_flatten_head_params(w2, b2, compute_dtype=jnp.float32,
                                     max_weight_block_bytes=128 * 1024)
    out2 = jax.block_until_ready(flatten_head_forward(x2, p2))
    ref2 = jnp.einsum("bvn,tn->bvt", x2.reshape(B, n_vars, nf2), w2,
                      precision=lax.Precision.HIGHEST) + b2
    assert out2.shape == (B, n_vars, T2)
    assert jnp.allclose(out2, ref2, atol=5e-3, rtol=5e-3)

    print("KERNEL_OK")
</pallas_src>

<mosaic_0001>
module attributes {stable_mosaic.version = 11 : i64} {
  func.func @_flatten_head_kernel_single(%arg0: i32, %arg1: memref<8x32xf32, #tpu.memory_space<vmem>>, %arg2: memref<32x8xf32, #tpu.memory_space<vmem>>, %arg3: memref<1x8xf32, #tpu.memory_space<vmem>>, %arg4: memref<8x8xf32, #tpu.memory_space<vmem>>) attributes {dimension_semantics = [#tpu.dimension_semantics<parallel>], iteration_bounds = array<i64: 1>, scalar_prefetch = 0 : i64, scratch_operands = 0 : i64, tpu.core_type = #tpu.core_type<tc>, window_params = [{transform_indices = @transform_0, window_bounds = array<i64: 8, 32>}, {pipeline_mode = #tpu.pipeline_mode<synchronous>, transform_indices = @transform_1, window_bounds = array<i64: 32, 8>}, {pipeline_mode = #tpu.pipeline_mode<synchronous>, transform_indices = @transform_2, window_bounds = array<i64: 1, 8>}, {transform_indices = @transform_3, window_bounds = array<i64: 8, 8>}]} {
    %c0 = arith.constant 0 : index
    %c0_0 = arith.constant 0 : index
    %0 = vector.load %arg1[%c0, %c0_0] : memref<8x32xf32, #tpu.memory_space<vmem>>, vector<8x32xf32>
    %c0_1 = arith.constant 0 : index
    %c0_2 = arith.constant 0 : index
    %1 = vector.load %arg2[%c0_1, %c0_2] : memref<32x8xf32, #tpu.memory_space<vmem>>, vector<32x8xf32>
    %cst = arith.constant dense<0.000000e+00> : vector<8x8xf32>
    %2 = tpu.matmul %0, %1, %cst {dimension_numbers = #tpu.dot_dimension_numbers<[1], [0], [0], [1], [0, 0, 1, 1], [], []>} : vector<8x32xf32>, vector<32x8xf32>, vector<8x8xf32> -> vector<8x8xf32>
    %c0_3 = arith.constant 0 : index
    %c0_4 = arith.constant 0 : index
    %3 = vector.load %arg3[%c0_3, %c0_4] : memref<1x8xf32, #tpu.memory_space<vmem>>, vector<1x8xf32>
    %4 = vector.broadcast %3 : vector<1x8xf32> to vector<8x8xf32>
    %5 = arith.addf %2, %4 : vector<8x8xf32>
    %c0_5 = arith.constant 0 : index
    %c0_6 = arith.constant 0 : index
    %6 = vector.load %arg4[%c0_5, %c0_6] : memref<8x8xf32, #tpu.memory_space<vmem>>, vector<8x8xf32>
    tpu.vector_store %arg4[%c0_5, %c0_6], %5 {strides = array<i32>} : memref<8x8xf32, #tpu.memory_space<vmem>>, vector<8x8xf32>,
    return
  }
  func.func @transform_0(%arg0: i32) -> (i32, i32) {
    %c0_i32 = arith.constant 0 : i32
    %c0_i32_0 = arith.constant 0 : i32
    return %arg0, %c0_i32 : i32, i32
  }
  func.func @transform_1(%arg0: i32) -> (i32, i32) {
    %c0_i32 = arith.constant 0 : i32
    %c0_i32_0 = arith.constant 0 : i32
    %c0_i32_1 = arith.constant 0 : i32
    return %c0_i32, %c0_i32_0 : i32, i32
  }
  func.func @transform_2(%arg0: i32) -> (i32, i32) {
    %c0_i32 = arith.constant 0 : i32
    %c0_i32_0 = arith.constant 0 : i32
    %c0_i32_1 = arith.constant 0 : i32
    return %c0_i32, %c0_i32_0 : i32, i32
  }
  func.func @transform_3(%arg0: i32) -> (i32, i32) {
    %c0_i32 = arith.constant 0 : i32
    %c0_i32_0 = arith.constant 0 : i32
    return %arg0, %c0_i32 : i32, i32
  }
}

</mosaic_0001>

<bundles_post_ra>
// kernel: tpu_custom_call.1
= control target key start
LH: loop header
LB: loop body
LE: loop exit
PB: predicated region body
PF: predicated region fallthrough
CT: control target
= control target key end

     0   :  { %s137_s0 = inlined_call_operand.vmem [shape: f32[8,32], index: 0, kind: input, shape index: {}]   ;;  %s138_s1 = inlined_call_operand.vmem [shape: f32[32,8], index: 1, kind: input, shape index: {}]   ;;  %s139_s2 = inlined_call_operand.vmem [shape: f32[1,8], index: 2, kind: input, shape index: {}]   ;;  %s140_s3 = inlined_call_operand.hbm [shape: f32[8,8], index: 3, kind: output, shape index: {}]  }
   0x1   :  { %v19_v0 = vld [vmem:[%s138_s1 + $0x18] sm:$0xff]  ;;  %v18_v1 = vld [vmem:[%s138_s1 + $0x10] sm:$0xff]  ;;  %v17_v2 = vld [vmem:[%s138_s1 + $0x8] sm:$0xff] }
   0x2   :  { %40 = vmatpush.msra.mxu0 %v19_v0 }
   0x3   :  { %8 = vsyncpa [#allocation3], 0  ;;  %v16_v3 = vld [vmem:[%s138_s1] sm:$0xff]  ;;  %vm24_vm0 = vcmask 261120   ;;  %s95_s24 = smov [#allocation2]   ;;  %s57_s28 = sshll.u32 %s140_s3, 4  ;;  %s58_s28 = int_to_ptr.hbm [resolvable:$true] %s57_s28 }
   0x4   :  { %41 = vmatpush.msra.mxu0 %v18_v1  ;;  %v15_v4 = vld [vmem:[%s137_s0] sm:$0xff]  ;;  %s55_s25 = sshll.u32 %s95_s24, 4  ;;  %vm48_vm1 = vcmask 64512   ;;  %s56_s25 = int_to_ptr.vmem [resolvable:$true] %s55_s25 }
   0x5   :  { %v68_v5 = vld [vmem:[%s139_s2] ss:$0 sm:$0xff] }
   0x6   :  { %42 = vmatpush.msra.mxu0 %v17_v2 }
   0x8   :  { %43 = vmatpush.msra.mxu0 %v16_v3 }
   0x9   :  { %66 = vmatmul.msk.f32.vlgmr.msra.gmra.mxu0 %vm24_vm0, %v15_v4 }
  0x86   :  { %v45_v6 = vpop.f32.mrf.mxu0 }
  0x87   :  { %v46_v7 = vadd.f32 %v68_v5, %v45_v6 }
  0x89   :  { %49 = vst.msk [vmem:[#allocation2] sm:$0xff] %vm48_vm1, %v46_v7 }
  0x8a   :  { %60 = dma.vmem_to_hbm [thread:$0]  %s56_s25, 128, %s58_s28, [#allocation3]  }
  0x8b   :  { %93 = dma.done.wait [#allocation3], 128  }
  0x8c   :  { %94 = vsyncadd [#allocation3], 4294967168 }
  0x8d   :  { %65 = vsyncpa [#allocation3], 1 }

</bundles_post_ra>
